<compile_context>
chip_gen: v6e
topology: v6e:2x2x1
jax: 0.10.0
libtpu: 0.0.40
codegen_flags: <defaults>
</compile_context>

<pallas_src>
import functools

import jax
import jax.numpy as jnp
from jax.experimental import pallas as pl
from jax.experimental.pallas import tpu as pltpu

LANE = 128     # TPU vreg lane width
SUBLANE = 8    # TPU vreg sublane count


def _round_up(n, m):
    return (n + m - 1) // m * m


# ---------------------------------------------------------------------------
# Pallas kernel: a chain of L layers  act <- maybe_relu(act @ W[l] + b[l])
# Grid = (batch tiles, layers).  The activation is resident in a VMEM scratch
# across the layer axis; the output block is written only on the last layer.
# ---------------------------------------------------------------------------
def _chain_kernel(relu_ref, x_ref, w_ref, b_ref, o_ref, act_ref):
    l = pl.program_id(1)

    @pl.when(l == 0)
    def _():
        act_ref[...] = x_ref[...]          # load this batch tile (f32, padded)

    # bf16 MXU inputs (weights pre-cast at construction), f32 accumulation.
    h = jnp.dot(act_ref[...].astype(jnp.bfloat16), w_ref[0],
                preferred_element_type=jnp.float32)
    h = h + b_ref[0]                        # f32 epilogue (v5e-safe)
    h = jnp.where(relu_ref[l] > 0, jnp.maximum(h, 0.0), h)
    act_ref[...] = h

    @pl.when(l == pl.num_programs(1) - 1)
    def _():
        o_ref[...] = act_ref[...].astype(o_ref.dtype)


@functools.partial(jax.jit, static_argnames=("d_in", "d_out", "dp", "batch_tile"))
def _run_chain(x, w_stack, b_stack, relu_flags, *, d_in, d_out, dp, batch_tile):
    """Pad x (batch + lanes), run the fused chain, slice once at the end."""
    B = x.shape[0]
    L = w_stack.shape[0]
    b_rows = _round_up(B, batch_tile)
    x_p = jnp.pad(x.astype(jnp.float32), ((0, b_rows - B), (0, dp - d_in)))

    out = pl.pallas_call(
        _chain_kernel,
        out_shape=jax.ShapeDtypeStruct((b_rows, dp), jnp.float32),
        grid_spec=pltpu.PrefetchScalarGridSpec(
            num_scalar_prefetch=1,                      # relu flags -> SMEM
            grid=(b_rows // batch_tile, L),
            in_specs=[
                pl.BlockSpec((batch_tile, dp), lambda i, l, relu: (i, 0)),
                pl.BlockSpec((1, dp, dp), lambda i, l, relu: (l, 0, 0)),
                pl.BlockSpec((1, 1, dp), lambda i, l, relu: (l, 0, 0)),
            ],
            out_specs=pl.BlockSpec((batch_tile, dp), lambda i, l, relu: (i, 0)),
            scratch_shapes=[pltpu.VMEM((batch_tile, dp), jnp.float32)],
        ),
        # Batch axis "parallel" (shards across v7x's 2 TCs); layer axis carries
        # the activation scratch -> "arbitrary".  Tiles (<=256x128 f32 blocks,
        # bf16 weight slabs) fit comfortably in v7x's 64 MiB VMEM.
        compiler_params=pltpu.CompilerParams(
            dimension_semantics=("parallel", "arbitrary")),
    )(relu_flags, x_p, w_stack, b_stack)

    return out[:B, :d_out]                  # single slice, fused under jit


# ---------------------------------------------------------------------------
# Layer + fused-chain objects used to populate the ModuleList container.
# ---------------------------------------------------------------------------
class PallasLinear:
    """Linear(d_in -> d_out) with optional fused ReLU (Pallas-backed)."""

    def __init__(self, w, b, relu=False):
        self.w = jnp.asarray(w, jnp.float32)
        self.b = jnp.asarray(b, jnp.float32).reshape(1, -1)
        self.d_in, self.d_out = self.w.shape
        self.relu = relu
        self._single = None

    def __call__(self, x):
        if self._single is None:
            self._single = _FusedChain([self])   # chain of length 1
        return self._single(x)


class _FusedChain:
    """A chain of PallasLinear layers compiled into ONE pallas_call."""

    def __init__(self, layers):
        dims = [layers[0].d_in]
        for lyr in layers:
            if lyr.d_in != dims[-1]:
                raise ValueError("consecutive layer dims do not match")
            dims.append(lyr.d_out)
        self.d_in, self.d_out = dims[0], dims[-1]
        self.dp = max(_round_up(d, LANE) for d in dims)
        dp = self.dp
        # Zero-pad all feature axes to the common 128-multiple once; padded
        # lanes stay exactly zero through every layer (zero rows/cols + relu(0)=0)
        # and are sliced off once at the end.
        w_pad = [jnp.pad(l.w, ((0, dp - l.d_in), (0, dp - l.d_out))) for l in layers]
        b_pad = [jnp.pad(l.b, ((0, 0), (0, dp - l.d_out))) for l in layers]
        self.w_stack = jnp.stack(w_pad).astype(jnp.bfloat16)   # bf16 MXU inputs
        self.b_stack = jnp.stack(b_pad).astype(jnp.float32)
        self.relu_flags = jnp.asarray([1 if l.relu else 0 for l in layers],
                                      jnp.int32)

    def __call__(self, x):
        B = x.shape[0]
        # Single tile at small B; 256-row tiles (full v6e/v7x MXU height, >=128
        # for v5e) once B grows — amortizes per-step pipeline overhead.
        batch_tile = min(_round_up(B, SUBLANE), 256)
        return _run_chain(x, self.w_stack, self.b_stack, self.relu_flags,
                          d_in=self.d_in, d_out=self.d_out, dp=self.dp,
                          batch_tile=batch_tile)


class TupleWrap:
    """Wraps a layer so it returns (out, aux) — exercises the tuple branch."""

    def __init__(self, layer):
        self.layer = layer

    def __call__(self, x):
        return (self.layer(x), None)


# ---------------------------------------------------------------------------
# The ModuleList container — forward semantics identical to the PyTorch module.
# ---------------------------------------------------------------------------
class ModuleList:
    def __init__(self, *layers):
        self.layers = list(layers)
        self._fused = None

    def _invalidate(self):
        self._fused = None

    def append(self, module):
        self.layers.append(module)
        self._invalidate()

    def extend(self, modules):
        self.layers.extend(modules)
        self._invalidate()

    def insert(self, index, module):
        self.layers.insert(index, module)
        self._invalidate()

    def forward(self, x):
        """Applies the computation pipeline."""
        # Fast path: an all-PallasLinear pipeline runs as ONE pallas_call with
        # the activation resident in VMEM across layers.
        if self.layers and all(isinstance(l, PallasLinear) for l in self.layers):
            if self._fused is None:
                self._fused = _FusedChain(self.layers)
            return self._fused(x)
        # Generic path (identical to the PyTorch forward): per-layer calls,
        # taking element 0 of tuple outputs.
        # TODO(synk): arbitrary non-Pallas submodules are applied as plain
        # Python callables here; only Linear(+ReLU) chains get kernel fusion.
        for layer in self.layers:
            x = layer(x)
            if isinstance(x, tuple):
                x = x[0]
        return x

    __call__ = forward


# ---------------------------------------------------------------------------
# Main
# ---------------------------------------------------------------------------
if __name__ == "__main__":
    key = jax.random.PRNGKey(0)
    k_x, k_w1, k_b1, k_w2, k_b2 = jax.random.split(key, 5)

    B, D_in, D_hid, D_out = 8, 32, 64, 32
    x = jax.random.normal(k_x, (B, D_in), dtype=jnp.float32)

    # Deterministic parameter init (torch.nn.Linear-style uniform bounds).
    bound1 = 1.0 / (D_in ** 0.5)
    bound2 = 1.0 / (D_hid ** 0.5)
    w1 = jax.random.uniform(k_w1, (D_in, D_hid), jnp.float32, -bound1, bound1)
    b1 = jax.random.uniform(k_b1, (1, D_hid), jnp.float32, -bound1, bound1)
    w2 = jax.random.uniform(k_w2, (D_hid, D_out), jnp.float32, -bound2, bound2)
    b2 = jax.random.uniform(k_b2, (1, D_out), jnp.float32, -bound2, bound2)

    lin1 = PallasLinear(w1, b1, relu=True)    # Linear(32->64) + ReLU
    lin2 = PallasLinear(w2, b2, relu=False)   # Linear(64->32)

    # Populate the container (exercising append): whole chain -> one kernel.
    model = ModuleList()
    model.append(lin1)
    model.append(lin2)

    out = jax.block_until_ready(model(x))

    # Reference in plain JAX (f32, unpadded).  bf16 MXU inputs => relaxed tol.
    ref = jnp.maximum(x @ w1 + b1, 0.0) @ w2 + b2
    assert out.shape == (B, D_out)
    assert jnp.allclose(out, ref, atol=2e-2, rtol=2e-2), "fused chain mismatch"

    # Generic per-layer path with a tuple-returning layer — same result.
    model2 = ModuleList(TupleWrap(lin1), lin2)
    out2 = jax.block_until_ready(model2(x))
    assert out2.shape == (B, D_out)
    assert jnp.allclose(out2, ref, atol=2e-2, rtol=2e-2), "generic path mismatch"

    print("KERNEL_OK")
</pallas_src>

<mosaic_0001>
module attributes {stable_mosaic.version = 11 : i64} {
  func.func @_chain_kernel(%arg0: i32, %arg1: i32, %arg2: memref<2xi32, #tpu.memory_space<smem>>, %arg3: memref<8x128xf32, #tpu.memory_space<vmem>>, %arg4: memref<1x128x128xbf16, #tpu.memory_space<vmem>>, %arg5: memref<1x1x128xf32, #tpu.memory_space<vmem>>, %arg6: memref<8x128xf32, #tpu.memory_space<vmem>>, %arg7: memref<8x128xf32, #tpu.memory_space<vmem>>) attributes {dimension_semantics = [#tpu.dimension_semantics<parallel>, #tpu.dimension_semantics<arbitrary>], iteration_bounds = array<i64: 1, 2>, scalar_prefetch = 1 : i64, scratch_operands = 1 : i64, tpu.core_type = #tpu.core_type<tc>, window_params = [{transform_indices = @transform_0, window_bounds = array<i64: 8, 128>}, {transform_indices = @transform_1, window_bounds = array<i64: 1, 128, 128>}, {transform_indices = @transform_2, window_bounds = array<i64: 1, 1, 128>}, {transform_indices = @transform_3, window_bounds = array<i64: 8, 128>}]} {
    %c0_i32 = arith.constant 0 : i32
    %0 = arith.cmpi eq, %arg1, %c0_i32 : i32
    %1 = arith.extui %0 : i1 to i32
    %c0_i32_0 = arith.constant 0 : i32
    %2 = arith.cmpi ne, %1, %c0_i32_0 : i32
    scf.if %2 {
      %c0_13 = arith.constant 0 : index
      %c0_14 = arith.constant 0 : index
      %22 = vector.load %arg3[%c0_13, %c0_14] : memref<8x128xf32, #tpu.memory_space<vmem>>, vector<8x128xf32>
      %c0_15 = arith.constant 0 : index
      %c0_16 = arith.constant 0 : index
      %23 = vector.load %arg7[%c0_15, %c0_16] : memref<8x128xf32, #tpu.memory_space<vmem>>, vector<8x128xf32>
      tpu.vector_store %arg7[%c0_15, %c0_16], %22 {strides = array<i32>} : memref<8x128xf32, #tpu.memory_space<vmem>>, vector<8x128xf32>,
    } else {
    }
    %c0 = arith.constant 0 : index
    %c0_1 = arith.constant 0 : index
    %3 = vector.load %arg7[%c0, %c0_1] : memref<8x128xf32, #tpu.memory_space<vmem>>, vector<8x128xf32>
    %4 = arith.truncf %3 : vector<8x128xf32> to vector<8x128xbf16>
    %c0_2 = arith.constant 0 : index
    %c0_3 = arith.constant 0 : index
    %c0_4 = arith.constant 0 : index
    %5 = vector.load %arg4[%c0_2, %c0_3, %c0_4] : memref<1x128x128xbf16, #tpu.memory_space<vmem>>, vector<1x128x128xbf16>
    %6 = vector.shape_cast %5 : vector<1x128x128xbf16> to vector<128x128xbf16>
    %cst = arith.constant dense<0.000000e+00> : vector<8x128xf32>
    %7 = tpu.matmul %4, %6, %cst {dimension_numbers = #tpu.dot_dimension_numbers<[1], [0], [0], [1], [0, 0, 1, 1], [], []>} : vector<8x128xbf16>, vector<128x128xbf16>, vector<8x128xf32> -> vector<8x128xf32>
    %c0_5 = arith.constant 0 : index
    %c0_6 = arith.constant 0 : index
    %c0_7 = arith.constant 0 : index
    %8 = vector.load %arg5[%c0_5, %c0_6, %c0_7] : memref<1x1x128xf32, #tpu.memory_space<vmem>>, vector<1x1x128xf32>
    %9 = vector.shape_cast %8 : vector<1x1x128xf32> to vector<1x128xf32>
    %10 = vector.broadcast %9 : vector<1x128xf32> to vector<8x128xf32>
    %11 = arith.addf %7, %10 : vector<8x128xf32>
    %12 = arith.index_cast %arg1 : i32 to index
    %13 = memref.load %arg2[%12] : memref<2xi32, #tpu.memory_space<smem>>
    %c0_i32_8 = arith.constant 0 : i32
    %14 = arith.cmpi sgt, %13, %c0_i32_8 : i32
    %cst_9 = arith.constant 0.000000e+00 : f32
    %15 = vector.broadcast %cst_9 : f32 to vector<8x128xf32>
    %16 = arith.maximumf %11, %15 : vector<8x128xf32>
    %17 = arith.select %14, %16, %11 : vector<8x128xf32>
    %c0_10 = arith.constant 0 : index
    %c0_11 = arith.constant 0 : index
    %18 = vector.load %arg7[%c0_10, %c0_11] : memref<8x128xf32, #tpu.memory_space<vmem>>, vector<8x128xf32>
    tpu.vector_store %arg7[%c0_10, %c0_11], %17 {strides = array<i32>} : memref<8x128xf32, #tpu.memory_space<vmem>>, vector<8x128xf32>,
    %c1_i32 = arith.constant 1 : i32
    %19 = arith.cmpi eq, %arg1, %c1_i32 : i32
    %20 = arith.extui %19 : i1 to i32
    %c0_i32_12 = arith.constant 0 : i32
    %21 = arith.cmpi ne, %20, %c0_i32_12 : i32
    scf.if %21 {
      %c0_13 = arith.constant 0 : index
      %c0_14 = arith.constant 0 : index
      %22 = vector.load %arg7[%c0_13, %c0_14] : memref<8x128xf32, #tpu.memory_space<vmem>>, vector<8x128xf32>
      %c0_15 = arith.constant 0 : index
      %c0_16 = arith.constant 0 : index
      %23 = vector.load %arg6[%c0_15, %c0_16] : memref<8x128xf32, #tpu.memory_space<vmem>>, vector<8x128xf32>
      tpu.vector_store %arg6[%c0_15, %c0_16], %22 {strides = array<i32>} : memref<8x128xf32, #tpu.memory_space<vmem>>, vector<8x128xf32>,
    } else {
    }
    return
  }
  func.func @transform_0(%arg0: i32, %arg1: i32, %arg2: memref<2xi32, #tpu.memory_space<smem>>) -> (i32, i32) {
    %c0_i32 = arith.constant 0 : i32
    %c0_i32_0 = arith.constant 0 : i32
    return %arg0, %c0_i32 : i32, i32
  }
  func.func @transform_1(%arg0: i32, %arg1: i32, %arg2: memref<2xi32, #tpu.memory_space<smem>>) -> (i32, i32, i32) {
    %c0_i32 = arith.constant 0 : i32
    %c0_i32_0 = arith.constant 0 : i32
    %c0_i32_1 = arith.constant 0 : i32
    return %arg1, %c0_i32, %c0_i32_0 : i32, i32, i32
  }
  func.func @transform_2(%arg0: i32, %arg1: i32, %arg2: memref<2xi32, #tpu.memory_space<smem>>) -> (i32, i32, i32) {
    %c0_i32 = arith.constant 0 : i32
    %c0_i32_0 = arith.constant 0 : i32
    %c0_i32_1 = arith.constant 0 : i32
    return %arg1, %c0_i32, %c0_i32_0 : i32, i32, i32
  }
  func.func @transform_3(%arg0: i32, %arg1: i32, %arg2: memref<2xi32, #tpu.memory_space<smem>>) -> (i32, i32) {
    %c0_i32 = arith.constant 0 : i32
    %c0_i32_0 = arith.constant 0 : i32
    return %arg0, %c0_i32 : i32, i32
  }
}

</mosaic_0001>

<bundles_post_ra>
// kernel: _run_chain.1
= control target key start
LH: loop header
LB: loop body
LE: loop exit
PB: predicated region body
PF: predicated region fallthrough
CT: control target
= control target key end

     0   :  { %s885_s0 = inlined_call_operand.vmem [shape: s32[2], index: 0, kind: input, shape index: {}]   ;;  %s886_s1 = inlined_call_operand.vmem [shape: f32[8,128], index: 1, kind: input, shape index: {}]   ;;  %s887_s2 = inlined_call_operand.hbm [shape: bf16[2,128,128], index: 2, kind: input, shape index: {}]   ;;  %s888_s3 = inlined_call_operand.vmem [shape: f32[2,1,128], index: 3, kind: input, shape index: {}]   ;;  %s889_s4 = inlined_call_operand.hbm [shape: f32[8,128], index: 4, kind: output, shape index: {}]  }
   0x1   :  { %s9_s17 = sshll.u32 %s885_s0, 4  ;;  %s10_s17 = int_to_ptr.vmem [resolvable:$true] %s9_s17 }
   0x2   :  { %s589_s18 = scalar_lea.vmem %s10_s17, 16  ;;  %p594_p1 = scmp.lt.s32.totalorder %s10_s17, %s10_s17 }
   0x3   :  { %p590_p0 = scmp.ne.s32.totalorder %s10_s17, %s589_s18  ;;  %p595_p2 = scmp.lt.s32.totalorder %s589_s18, %s589_s18 }
   0x5   :  { %p596_p3 = por %p595_p2, %p594_p1 }
   0x7   :  { %p597_p4 = pnand %p596_p3, %p590_p0 }
   0x9   :  { %600 = shalt.err (!%p597_p4)  }
   0xa   :  { %s711_s19 = smov [#allocation4]  }
   0xb   :  { %12 = dma.vmem_to_smem %s10_s17, 16, %s711_s19, [#allocation3] }
   0xc   :  { %677 = dma.done.wait [#allocation3], 16 }
   0xd   :  { %678 = vsyncadd [#allocation3], 4294967280 }
   0xe   :  { %14 = sfence }
   0xf   :  { %15 = vsyncpa [#allocation6], 0 }
  0x10   :  { %17 = vsyncpa [#allocation6 + $0x1], 0 }
  0x11   :  { %18 = vsyncpa [#allocation7], 0  ;;  %s746_s20 = smov 0   ;;  %s748_s21 = smov 0  }
  0x12   :  { %s750_s0 = smov 0   ;;  %s752_s22 = smov 0  }
  0x13   :  { %s754_s23 = smov 0   ;;  %s756_s24 = smov 0  }
  0x14 LB: > { %s460_s25 = sadd.s32 4294967295, %s709_s24   ;;  %s33_s26 = sadd.s32 1, %s705_s23  ;;  %s709_s24 = sphi %s756_s24, %s24_s24   ;;  %s705_s23 = sphi %s754_s23, %s898_s23   ;;  %s701_s22 = sphi %s752_s22, %s897_s22   ;;  %s697_s0 = sphi %s750_s0, %s896_s0   ;;  %s693_s21 = sphi %s748_s21, %s895_s21   ;;  %s689_s20 = sphi %s746_s20, %s894_s20  }
  0x15   : > { %p34_p5 = scmp.ge.s32.totalorder %s33_s26, 2  ;;  %s69_s27 = sadd.s32 1, %s697_s0 }
  0x16   : > { %p76_p6 = scmp.ne.s32.totalorder %s697_s0, %s693_s21  ;;  %p77_p7 = scmp.eq.s32.totalorder %s709_s24, 0 }
  0x17   : > { %s900_s26 = smov (%p34_p5, %s33_s26), 0  ;;  %p82_p9 = scmp.ne.s32.totalorder %s693_s21, %s689_s20 }
  0x18   : > { %p782_p8 = por %p77_p7, %p76_p6  ;;  %s66_s29 = ssub.s32 %s705_s23, %s900_s26 }
  0x19   : > { %p83_p10 = scmp.eq.s32.totalorder %s460_s25, 0  ;;  %p67_p11 = scmp.eq.s32.totalorder %s66_s29, 0 }
  0x1a   : > { %p524_p13 = scmp.lt.s32.totalorder %s709_s24, 2  ;;  %s165_s6 = sand.u32 1, %s697_s0  }
  0x1b   : > { %p791_p12 = por %p83_p10, %p82_p9  ;;  %s484_s7 = sshll.u32 %s705_s23, 10 }
  0x1c   : > { %s797_s5 = scalar_select %p67_p11, %s697_s0, %s69_s27  }
  0x1d   : > { %s464_s8 = sshll.u32 %s165_s6, 6  ;;  %s175_s11 = scalar_lea.hbm %s887_s2, %s484_s7 }
  0x1e   : > { %s169_s12 = scalar_lea.vmem [#allocation5], %s464_s8  ;;  %p806_p0 = pnand %p524_p13, %p782_p8 }
  0x1f   : > { %s176_s13 = sshll.u32 %s169_s12, 4  ;;  %s166_s15 = scalar_lea.sflag [#allocation6], %s165_s6  ;;  %s177_s13 = int_to_ptr.vmem [resolvable:$true] %s176_s13 }
  0x20   : > { %p603_p1 = pneg %p806_p0  ;;  %s614_s16 = scalar_lea.vmem %s177_s13, 1024 }
  0x21   : > { %p615_p2 = scmp.ne.s32.totalorder %s177_s13, %s614_s16  ;;  %s712_s17 = smov [#allocation5]  }
  0x22   : > { %s619_s18 = sshll.u32 %s712_s17, 4  ;;  %s620_s18 = int_to_ptr.vmem [resolvable:$false] %s619_s18 }
  0x23   : > { %p617_p3 = pnand %p615_p2, %p603_p1  ;;  %s621_s19 = scalar_lea.vmem %s620_s18, 2048 }
  0x24   : > { %p622_p5 = scmp.lt.s32.totalorder %s177_s13, %s620_s18  ;;  %p623_p6 = scmp.lt.s32.totalorder %s621_s19, %s614_s16 }
  0x25   : > { %p618_p4 = pneg %p617_p3 }
  0x26   : > { %p624_p7 = por %p623_p6, %p622_p5 }
  0x28   : > { %p625_p8 = pnand %p624_p7, %p618_p4 }
  0x2a   : > { %628 = shalt.err (!%p625_p8)
}
  0x2b   : > { %s713_s20 = smov 64   ;;  %s714_s27 = smov 4  }
  0x2c   : > { %523 = dma.hbm_to_vmem [thread:$0]  (!%p806_p0), %s175_s11, 1024, %s177_s13, %s166_s15, %s713_s20, %s713_s20, %s714_s27  }
  0x2d   : > { %p467_p9 = scmp.ge.s32.totalorder %s709_s24, 1  ;;  %p190_p10 = scmp.lt.s32.totalorder %s709_s24, 3 }
  0x2f   : > { %p191_p11 = pnand %p467_p9, %p190_p10 }
  0x30   : > { %s196_s28 = sand.u32 (!%p191_p11), 1, %s693_s21  }
  0x31   : > { %194 = sbr.rel (%p191_p11) target bundleno = 320 (0x140), region = 32  ;;  %s468_s29 = sshll.u32 (!%p191_p11), %s196_s28, 6 }
  0x32   : > { %s197_s6 = scalar_lea.sflag (!%p191_p11), [#allocation6], %s196_s28  ;;  %s817_s7 = scalar_lea.vmem (!%p191_p11), [#allocation5], %s468_s29 }
  0x36   : > { %680 = dma.done.wait (%p791_p12), %s197_s6, 1024  }
  0x37   : > { %682 = vsyncadd (%p791_p12), %s197_s6, 4294966272  ;;  %p229_p13 = scmp.lt.s32.totalorder %s701_s22, 1  ;;  %p469_p0 = scmp.ne.s32.totalorder %s701_s22, 0 }
  0x39   : > { %s825_s8 = scalar_select %p229_p13, %s701_s22, 1 }
  0x3a   : > { %236 = sbr.rel (%p469_p0) target bundleno = 65 (0x41), region = 40 }
  0x3b   : > { %s231_s11 = scalar_lea.vmem %s888_s3, %s825_s8 }
  0x3f   : > { %v237_v0 = vld [vmem:[%s886_s1] sm:$0xff] }
  0x40   : > { %238 = vst [vmem:[#allocation2] sm:$0xff] %v237_v0 }
  0x41 PF: > { %v581_v1 = vld [vmem:[%s817_s7 + $0x38] sm:$0xff]   ;;  %v715_v2 = vmov 0.0   ;;  %v582_v3 = vld [vmem:[%s817_s7 + $0x30] sm:$0xff]   ;;  %vm716_vm0 = vmmov 0   ;;  %v583_v4 = vld [vmem:[%s817_s7 + $0x28] sm:$0xff]   ;;  %s352_s30 = sld [smem:[#allocation4 + %s701_s22]] }
  0x42   : > { %494 = vmatprep.subr.bf16.mxu0 %v715_v2  ;;  %510 = vmatprep.mubr.msk.bf16.mxu0 %vm716_vm0, %v715_v2  ;;  %v584_v5 = vld [vmem:[%s817_s7 + $0x20] sm:$0xff]   ;;  %v585_v6 = vld [vmem:[%s817_s7 + $0x18] sm:$0xff]   ;;  %v586_v7 = vld [vmem:[%s817_s7 + $0x10] sm:$0xff]   ;;  %p479_p1 = scmp.ne.s32.totalorder %s701_s22, 1 }
  0x43   : > { %495 = vmatpush3.bf16.msra.mxu0 %v581_v1  ;;  %v587_v8 = vld [vmem:[%s817_s7 + $0x8] sm:$0xff]   ;;  %v588_v9 = vld [vmem:[%s817_s7] sm:$0xff]   ;;  %v470_v12 = vld [vmem:[%s231_s11] ss:$0 sm:$0xff] }
  0x44   : > { %496 = vmatprep.subr.bf16.mxu0 %v715_v2 }
  0x47   : > { %497 = vmatpush3.bf16.msra.mxu0 %v582_v3  ;;  %v239_v10 = vld [vmem:[#allocation2] sm:$0xff]  ;;  %p353_p12 = scmp.gt.s32.totalorder %s352_s30, 0 }
  0x48   : > { %498 = vmatprep.subr.bf16.mxu0 %v715_v2  ;;  %v240_v11 = vpack.c.bf16 %v239_v10, %v239_v10 }
  0x49   : > { %s355_s14 = scalar_select %p353_p12, 1, 0 }
  0x4b   : > { %499 = vmatpush3.bf16.msra.mxu0 %v583_v4  ;;  %v356_v13 = vstv %s355_s14 }
  0x4c   : > { %500 = vmatprep.subr.bf16.mxu0 %v715_v2  ;;  %vm357_vm1 = vcmp.eq.s32.totalorder %v356_v13, 1 }
  0x4f   : > { %501 = vmatpush3.bf16.msra.mxu0 %v584_v5 }
  0x50   : > { %502 = vmatprep.subr.bf16.mxu0 %v715_v2 }
  0x53   : > { %503 = vmatpush3.bf16.msra.mxu0 %v585_v6 }
  0x54   : > { %504 = vmatprep.subr.bf16.mxu0 %v715_v2 }
  0x57   : > { %505 = vmatpush3.bf16.msra.mxu0 %v586_v7 }
  0x58   : > { %506 = vmatprep.subr.bf16.mxu0 %v715_v2 }
  0x5b   : > { %507 = vmatpush3.bf16.msra.mxu0 %v587_v8 }
  0x5c   : > { %508 = vmatprep.subr.bf16.mxu0 %v715_v2 }
  0x5f   : > { %509 = vmatpush3.bf16.msra.mxu0 %v588_v9 }
  0x62   : > { %511 = vmatmul.mubr.bf16.vlgmr.msra.gmra.mxu0 %v240_v11 }
 0x122   : > { %v346_v14 = vpop.f32.mrf.mxu0 }
 0x123   : > { %v347_v15 = vadd.f32 %v470_v12, %v346_v14 }
 0x124   : > { %v512_v16 = vpop.f32.mrf.mxu0  ;;  %363 = sbr.rel (%p479_p1) target bundleno = 305 (0x131), region = 44 }
 0x125   : > { %v354_v17 = vmax.f32 %v347_v15, 0.0 }
 0x126   : > { %v349_v18 = vpop.f32.mrf.mxu0 }
 0x127   : > { %v358_v19 = vsel %vm357_vm1, %v354_v17, %v347_v15 }
 0x128   : > { %359 = vst [vmem:[#allocation2] sm:$0xff] %v358_v19  ;;  %v513_v20 = vpop.f32.mrf.mxu0 }
 0x12f   : > { %v364_v21 = vld [vmem:[#allocation2] sm:$0xff] }
 0x130   : > { %365 = vst [vmem:[#allocation8] sm:$0xff] %v364_v21 }
 0x131 PF: > { %p852_p2 = scmp.eq.s32.totalorder %s460_s25, 1  ;;  %s717_s18 = smov [#allocation8]  }
 0x132   : > { %s375_s19 = sshll.u32 %s717_s18, 4  ;;  %s376_s19 = int_to_ptr.vmem [resolvable:$true] %s375_s19 }
 0x133   : > { %s629_s20 = scalar_lea.vmem %s376_s19, 128  ;;  %p636_p6 = scmp.lt.s32.totalorder %s376_s19, %s376_s19 }
 0x134   : > { %p630_p3 = scmp.ne.s32.totalorder %s376_s19, %s629_s20  ;;  %p637_p7 = scmp.lt.s32.totalorder %s629_s20, %s629_s20 }
 0x136   : > { %p631_p4 = pnand %p630_p3, %p852_p2  ;;  %p638_p8 = por %p637_p7, %p636_p6 }
 0x138   : > { %p632_p5 = pneg %p631_p4 }
 0x13a   : > { %p639_p9 = pnand %p638_p8, %p632_p5 }
 0x13c   : > { %642 = shalt.err (!%p639_p9)
}
 0x13d   : > { %517 = dma.vmem_to_hbm [thread:$0]  (%p852_p2), %s376_s19, 128, %s889_s4, [#allocation7]  }
 0x13e   : > { %684 = dma.done.wait (%p852_p2), [#allocation7], 128  }
 0x13f   : > { %686 = vsyncadd (%p852_p2), [#allocation7], 4294967168 }
 0x140 PF: > { %s24_s24 = sadd.s32 1, %s709_s24   ;;  %s894_s20 = smov %s693_s21 }
 0x141   : > { %p21_p10 = scmp.ge.s32.totalorder %s24_s24, 4   ;;  %s895_s21 = smov %s697_s0 }
 0x142   : > { %s896_s0 = smov %s797_s5  ;;  %s897_s22 = smov %s705_s23 }
 0x143   : > { %s898_s23 = smov %s900_s26  ;;  %23 = sbr.rel (!%p21_p10) target bundleno = 20 (0x14), region = 84 }
 0x148   :  { %388 = vsyncpa [#allocation6], 1 }
 0x149   :  { %390 = vsyncpa [#allocation6 + $0x1], 1 }
 0x14a   :  { %391 = vsyncpa [#allocation7], 1 }
 0x14b   :  { %393 = vsyncpa [#allocation7 + $0x1], 1 }

</bundles_post_ra>
